<compile_context>
chip_gen: v7x
topology: tpu7x:2x2x1
jax: 0.10.0
libtpu: 0.0.40
codegen_flags: <defaults>
</compile_context>

<pallas_src>
import functools

import jax
import jax.numpy as jnp
from jax import lax
from jax.experimental import pallas as pl
from jax.experimental.pallas import tpu as pltpu


# ----------------------------- fused Pallas kernel -----------------------------
def _style_block_kernel(x_ref, s1_ref, d_ref, w_ref, m_ref, o_ref, *, H, W):
    """Fused StyleBlock (modulated+demodulated 3x3 conv + mish) for one batch element.

    x_ref  : (1, Cin, H*W)   NCHW input, spatial flattened onto the lane axis
    s1_ref : (1, Cin, 1)     per-sample modulation scale (style + 1)
    d_ref  : (1, Cout, 1)    per-sample demodulation scale (hoisted to wrapper)
    w_ref  : (9, Cout, Cin)  base conv weight, tap-major (k = ky*3 + kx)
    m_ref  : (9, 1, H*W)     SAME-padding masks per tap (precomputed constants)
    o_ref  : (1, Cout, H*W)  NCHW-native output (no channel padding)
    """
    HW = H * W
    Cout = o_ref.shape[1]

    # Modulate input channels:  conv(x, W*(s+1)_per_cin) == conv(x*(s+1)_per_cin, W).
    x2 = x_ref[0].astype(jnp.float32) * s1_ref[0]            # (Cin, HW), lane-dense

    # 3x3 conv = 9 accumulating (Cout,Cin)x(Cin,HW) MXU dots on lane-rolled, masked taps.
    # (Static 9-iteration loop: inherently bounded by the 3x3 kernel, unlike the old
    #  H//hc chunk loop.)
    acc = jnp.zeros((Cout, HW), jnp.float32)
    for ky in range(3):
        for kx in range(3):
            k = ky * 3 + kx
            off = (ky - 1) * W + (kx - 1)                    # flattened spatial offset
            if off == 0:
                t = x2                                       # center tap: no shift, no mask
            else:
                t = pltpu.roll(x2, shift=(-off) % HW, axis=1)  # shifted[p] = x2[p + off]
                t = t * m_ref[k]                             # zero out-of-image / row-wrap
            acc = acc + jnp.dot(w_ref[k], t,
                                preferred_element_type=jnp.float32)

    y = acc * d_ref[0]                                       # demodulate, (Cout,1) bcast
    sp = jnp.maximum(y, 0.0) + jnp.log1p(jnp.exp(-jnp.abs(y)))  # stable softplus
    o_ref[0] = (y * jnp.tanh(sp)).astype(o_ref.dtype)        # mish


# --------------------------------- wrapper ---------------------------------
def style_block_forward(x_nchw, z, params, *, eps=1e-8):
    """StyleBlock forward. x in PyTorch NCHW; returns NCHW (B, nc2, H, W)."""
    w_oihw = params["conv_w"]                        # (Cout, Cin, 3, 3)
    wl, bl = params["style_w"], params["style_b"]    # (nc1, z_dims), (nc1,)
    B, Cin, H, W = x_nchw.shape
    Cout = w_oihw.shape[0]
    HW = H * W

    # ---- tiny per-sample preprocessing, hoisted to plain JAX (exact f32) ----
    style = z @ wl.T + bl                            # (B, Cin)  == nn.Linear(z_dims, nc1)
    s1 = style + 1.0                                 # modulation scale per input channel
    wsq = jnp.sum(w_oihw * w_oihw, axis=(2, 3))      # (Cout, Cin): sum over (ky, kx) of W^2
    d = lax.rsqrt(jnp.sum((s1 * s1)[:, None, :] * wsq[None, :, :], axis=-1) + eps)  # (B,Cout)

    # Weight, tap-major: k = ky*3 + kx  ->  (9, Cout, Cin)
    w_taps = jnp.transpose(w_oihw, (2, 3, 0, 1)).reshape(9, Cout, Cin)

    # SAME-padding masks per tap over the flattened spatial axis (constants, built once).
    pos = jnp.arange(HW, dtype=jnp.int32)
    row, col = pos // W, pos % W
    masks = []
    for ky in range(3):
        for kx in range(3):
            dy, dx = ky - 1, kx - 1
            ok = (row + dy >= 0) & (row + dy < H) & (col + dx >= 0) & (col + dx < W)
            masks.append(ok)
    masks = jnp.stack(masks).astype(x_nchw.dtype).reshape(9, 1, HW)

    x_flat = x_nchw.reshape(B, Cin, HW)              # NCHW kept: pure reshape, no transpose

    kern = functools.partial(_style_block_kernel, H=H, W=W)
    out = pl.pallas_call(
        kern,
        out_shape=jax.ShapeDtypeStruct((B, Cout, HW), x_nchw.dtype),
        grid=(B,),
        in_specs=[
            pl.BlockSpec((1, Cin, HW), lambda b: (b, 0, 0)),
            pl.BlockSpec((1, Cin, 1), lambda b: (b, 0, 0)),
            pl.BlockSpec((1, Cout, 1), lambda b: (b, 0, 0)),
            pl.BlockSpec((9, Cout, Cin), lambda b: (0, 0, 0)),
            pl.BlockSpec((9, 1, HW), lambda b: (0, 0, 0)),
        ],
        out_specs=pl.BlockSpec((1, Cout, HW), lambda b: (b, 0, 0)),
        compiler_params=pltpu.CompilerParams(dimension_semantics=("parallel",)),
    )(x_flat, s1[:, :, None], d[:, :, None], w_taps, masks)

    return out.reshape(B, Cout, H, W)                # NCHW-native output, free reshape


# --------------------- pure-JAX reference (standard Conv2DMod) ---------------------
def reference(x_nchw, z, params, *, eps=1e-8):
    w_oihw = params["conv_w"]
    wl, bl = params["style_w"], params["style_b"]
    style = z @ wl.T + bl                                            # (B, Cin)
    w = w_oihw[None] * (style[:, None, :, None, None] + 1.0)         # (B, Cout, Cin, 3, 3)
    d = lax.rsqrt(jnp.sum(w * w, axis=(2, 3, 4), keepdims=True) + eps)
    w = w * d                                                        # demodulated per-sample weights
    x = jnp.transpose(x_nchw, (0, 2, 3, 1))                          # NHWC
    w_hwio = jnp.transpose(w, (0, 3, 4, 2, 1))                       # (B, 3, 3, Cin, Cout)

    def conv_one(xb, wb):
        return lax.conv_general_dilated(
            xb[None], wb, (1, 1), "SAME",
            dimension_numbers=("NHWC", "HWIO", "NHWC"))[0]

    y = jax.vmap(conv_one)(x, w_hwio)                                # (B, H, W, Cout)
    y = y * jnp.tanh(jax.nn.softplus(y))                             # mish
    return jnp.transpose(y, (0, 3, 1, 2))                            # NCHW


if __name__ == "__main__":
    B, nc1, nc2, z_dims, H, W = 2, 4, 8, 16, 16, 16
    key = jax.random.PRNGKey(0)
    kx, kz, kw, kl, kb = jax.random.split(key, 5)
    x = jax.random.normal(kx, (B, nc1, H, W), jnp.float32)           # PyTorch NCHW input
    z = jax.random.normal(kz, (B, z_dims), jnp.float32)
    params = dict(
        conv_w=0.2 * jax.random.normal(kw, (nc2, nc1, 3, 3), jnp.float32),  # OIHW, no bias
        style_w=0.2 * jax.random.normal(kl, (nc1, z_dims), jnp.float32),    # nn.Linear(z_dims, nc1)
        style_b=0.1 * jax.random.normal(kb, (nc1,), jnp.float32),
    )

    out = jax.block_until_ready(style_block_forward(x, z, params))
    ref = jax.block_until_ready(reference(x, z, params))

    assert out.shape == (B, nc2, H, W), out.shape
    err = float(jnp.max(jnp.abs(out - ref)))
    assert jnp.allclose(out, ref, rtol=1e-3, atol=2e-3), err
    print("KERNEL_OK")
</pallas_src>

<mosaic_0001>
module attributes {stable_mosaic.version = 11 : i64} {
  func.func @_style_block_kernel(%arg0: i32, %arg1: memref<1x4x256xf32, #tpu.memory_space<vmem>>, %arg2: memref<1x4x1xf32, #tpu.memory_space<vmem>>, %arg3: memref<1x8x1xf32, #tpu.memory_space<vmem>>, %arg4: memref<9x8x4xf32, #tpu.memory_space<vmem>>, %arg5: memref<9x1x256xf32, #tpu.memory_space<vmem>>, %arg6: memref<1x8x256xf32, #tpu.memory_space<vmem>>) attributes {dimension_semantics = [#tpu.dimension_semantics<parallel>], iteration_bounds = array<i64: 2>, scalar_prefetch = 0 : i64, scratch_operands = 0 : i64, tpu.core_type = #tpu.core_type<tc>, window_params = [{transform_indices = @transform_0, window_bounds = array<i64: 1, 4, 256>}, {transform_indices = @transform_1, window_bounds = array<i64: 1, 4, 1>}, {transform_indices = @transform_2, window_bounds = array<i64: 1, 8, 1>}, {pipeline_mode = #tpu.pipeline_mode<synchronous>, transform_indices = @transform_3, window_bounds = array<i64: 9, 8, 4>}, {pipeline_mode = #tpu.pipeline_mode<synchronous>, transform_indices = @transform_4, window_bounds = array<i64: 9, 1, 256>}, {transform_indices = @transform_5, window_bounds = array<i64: 1, 8, 256>}]} {
    %c0 = arith.constant 0 : index
    %c0_0 = arith.constant 0 : index
    %c0_1 = arith.constant 0 : index
    %0 = vector.load %arg1[%c0, %c0_0, %c0_1] : memref<1x4x256xf32, #tpu.memory_space<vmem>>, vector<1x4x256xf32>
    %1 = vector.shape_cast %0 : vector<1x4x256xf32> to vector<4x256xf32>
    %c0_2 = arith.constant 0 : index
    %c0_3 = arith.constant 0 : index
    %c0_4 = arith.constant 0 : index
    %2 = vector.load %arg2[%c0_2, %c0_3, %c0_4] : memref<1x4x1xf32, #tpu.memory_space<vmem>>, vector<1x4x1xf32>
    %3 = vector.shape_cast %2 : vector<1x4x1xf32> to vector<4x1xf32>
    %4 = vector.broadcast %3 : vector<4x1xf32> to vector<4x256xf32>
    %5 = arith.mulf %1, %4 : vector<4x256xf32>
    %cst = arith.constant 0.000000e+00 : f32
    %6 = vector.broadcast %cst : f32 to vector<8x256xf32>
    %c17_i32 = arith.constant 17 : i32
    %7 = tpu.dynamic_rotate %5 by %c17_i32 dim 1 : vector<4x256xf32>, i32 -> vector<4x256xf32>
    %c0_5 = arith.constant 0 : index
    %c0_6 = arith.constant 0 : index
    %c0_7 = arith.constant 0 : index
    %8 = vector.load %arg5[%c0_5, %c0_6, %c0_7] : memref<9x1x256xf32, #tpu.memory_space<vmem>>, vector<1x1x256xf32>
    %9 = vector.shape_cast %8 : vector<1x1x256xf32> to vector<1x256xf32>
    %10 = vector.broadcast %9 : vector<1x256xf32> to vector<4x256xf32>
    %11 = arith.mulf %7, %10 : vector<4x256xf32>
    %c0_8 = arith.constant 0 : index
    %c0_9 = arith.constant 0 : index
    %c0_10 = arith.constant 0 : index
    %12 = vector.load %arg4[%c0_8, %c0_9, %c0_10] : memref<9x8x4xf32, #tpu.memory_space<vmem>>, vector<1x8x4xf32>
    %13 = vector.shape_cast %12 : vector<1x8x4xf32> to vector<8x4xf32>
    %cst_11 = arith.constant dense<0.000000e+00> : vector<8x256xf32>
    %14 = tpu.matmul %13, %11, %cst_11 {dimension_numbers = #tpu.dot_dimension_numbers<[1], [0], [0], [1], [0, 0, 1, 1], [], []>} : vector<8x4xf32>, vector<4x256xf32>, vector<8x256xf32> -> vector<8x256xf32>
    %15 = arith.addf %6, %14 : vector<8x256xf32>
    %c16_i32 = arith.constant 16 : i32
    %16 = tpu.dynamic_rotate %5 by %c16_i32 dim 1 : vector<4x256xf32>, i32 -> vector<4x256xf32>
    %c1 = arith.constant 1 : index
    %c0_12 = arith.constant 0 : index
    %c0_13 = arith.constant 0 : index
    %17 = vector.load %arg5[%c1, %c0_12, %c0_13] : memref<9x1x256xf32, #tpu.memory_space<vmem>>, vector<1x1x256xf32>
    %18 = vector.shape_cast %17 : vector<1x1x256xf32> to vector<1x256xf32>
    %19 = vector.broadcast %18 : vector<1x256xf32> to vector<4x256xf32>
    %20 = arith.mulf %16, %19 : vector<4x256xf32>
    %c1_14 = arith.constant 1 : index
    %c0_15 = arith.constant 0 : index
    %c0_16 = arith.constant 0 : index
    %21 = vector.load %arg4[%c1_14, %c0_15, %c0_16] : memref<9x8x4xf32, #tpu.memory_space<vmem>>, vector<1x8x4xf32>
    %22 = vector.shape_cast %21 : vector<1x8x4xf32> to vector<8x4xf32>
    %cst_17 = arith.constant dense<0.000000e+00> : vector<8x256xf32>
    %23 = tpu.matmul %22, %20, %cst_17 {dimension_numbers = #tpu.dot_dimension_numbers<[1], [0], [0], [1], [0, 0, 1, 1], [], []>} : vector<8x4xf32>, vector<4x256xf32>, vector<8x256xf32> -> vector<8x256xf32>
    %24 = arith.addf %15, %23 : vector<8x256xf32>
    %c15_i32 = arith.constant 15 : i32
    %25 = tpu.dynamic_rotate %5 by %c15_i32 dim 1 : vector<4x256xf32>, i32 -> vector<4x256xf32>
    %c2 = arith.constant 2 : index
    %c0_18 = arith.constant 0 : index
    %c0_19 = arith.constant 0 : index
    %26 = vector.load %arg5[%c2, %c0_18, %c0_19] : memref<9x1x256xf32, #tpu.memory_space<vmem>>, vector<1x1x256xf32>
    %27 = vector.shape_cast %26 : vector<1x1x256xf32> to vector<1x256xf32>
    %28 = vector.broadcast %27 : vector<1x256xf32> to vector<4x256xf32>
    %29 = arith.mulf %25, %28 : vector<4x256xf32>
    %c2_20 = arith.constant 2 : index
    %c0_21 = arith.constant 0 : index
    %c0_22 = arith.constant 0 : index
    %30 = vector.load %arg4[%c2_20, %c0_21, %c0_22] : memref<9x8x4xf32, #tpu.memory_space<vmem>>, vector<1x8x4xf32>
    %31 = vector.shape_cast %30 : vector<1x8x4xf32> to vector<8x4xf32>
    %cst_23 = arith.constant dense<0.000000e+00> : vector<8x256xf32>
    %32 = tpu.matmul %31, %29, %cst_23 {dimension_numbers = #tpu.dot_dimension_numbers<[1], [0], [0], [1], [0, 0, 1, 1], [], []>} : vector<8x4xf32>, vector<4x256xf32>, vector<8x256xf32> -> vector<8x256xf32>
    %33 = arith.addf %24, %32 : vector<8x256xf32>
    %c1_i32 = arith.constant 1 : i32
    %34 = tpu.dynamic_rotate %5 by %c1_i32 dim 1 : vector<4x256xf32>, i32 -> vector<4x256xf32>
    %c3 = arith.constant 3 : index
    %c0_24 = arith.constant 0 : index
    %c0_25 = arith.constant 0 : index
    %35 = vector.load %arg5[%c3, %c0_24, %c0_25] : memref<9x1x256xf32, #tpu.memory_space<vmem>>, vector<1x1x256xf32>
    %36 = vector.shape_cast %35 : vector<1x1x256xf32> to vector<1x256xf32>
    %37 = vector.broadcast %36 : vector<1x256xf32> to vector<4x256xf32>
    %38 = arith.mulf %34, %37 : vector<4x256xf32>
    %c3_26 = arith.constant 3 : index
    %c0_27 = arith.constant 0 : index
    %c0_28 = arith.constant 0 : index
    %39 = vector.load %arg4[%c3_26, %c0_27, %c0_28] : memref<9x8x4xf32, #tpu.memory_space<vmem>>, vector<1x8x4xf32>
    %40 = vector.shape_cast %39 : vector<1x8x4xf32> to vector<8x4xf32>
    %cst_29 = arith.constant dense<0.000000e+00> : vector<8x256xf32>
    %41 = tpu.matmul %40, %38, %cst_29 {dimension_numbers = #tpu.dot_dimension_numbers<[1], [0], [0], [1], [0, 0, 1, 1], [], []>} : vector<8x4xf32>, vector<4x256xf32>, vector<8x256xf32> -> vector<8x256xf32>
    %42 = arith.addf %33, %41 : vector<8x256xf32>
    %c4 = arith.constant 4 : index
    %c0_30 = arith.constant 0 : index
    %c0_31 = arith.constant 0 : index
    %43 = vector.load %arg4[%c4, %c0_30, %c0_31] : memref<9x8x4xf32, #tpu.memory_space<vmem>>, vector<1x8x4xf32>
    %44 = vector.shape_cast %43 : vector<1x8x4xf32> to vector<8x4xf32>
    %cst_32 = arith.constant dense<0.000000e+00> : vector<8x256xf32>
    %45 = tpu.matmul %44, %5, %cst_32 {dimension_numbers = #tpu.dot_dimension_numbers<[1], [0], [0], [1], [0, 0, 1, 1], [], []>} : vector<8x4xf32>, vector<4x256xf32>, vector<8x256xf32> -> vector<8x256xf32>
    %46 = arith.addf %42, %45 : vector<8x256xf32>
    %c255_i32 = arith.constant 255 : i32
    %47 = tpu.dynamic_rotate %5 by %c255_i32 dim 1 : vector<4x256xf32>, i32 -> vector<4x256xf32>
    %c5 = arith.constant 5 : index
    %c0_33 = arith.constant 0 : index
    %c0_34 = arith.constant 0 : index
    %48 = vector.load %arg5[%c5, %c0_33, %c0_34] : memref<9x1x256xf32, #tpu.memory_space<vmem>>, vector<1x1x256xf32>
    %49 = vector.shape_cast %48 : vector<1x1x256xf32> to vector<1x256xf32>
    %50 = vector.broadcast %49 : vector<1x256xf32> to vector<4x256xf32>
    %51 = arith.mulf %47, %50 : vector<4x256xf32>
    %c5_35 = arith.constant 5 : index
    %c0_36 = arith.constant 0 : index
    %c0_37 = arith.constant 0 : index
    %52 = vector.load %arg4[%c5_35, %c0_36, %c0_37] : memref<9x8x4xf32, #tpu.memory_space<vmem>>, vector<1x8x4xf32>
    %53 = vector.shape_cast %52 : vector<1x8x4xf32> to vector<8x4xf32>
    %cst_38 = arith.constant dense<0.000000e+00> : vector<8x256xf32>
    %54 = tpu.matmul %53, %51, %cst_38 {dimension_numbers = #tpu.dot_dimension_numbers<[1], [0], [0], [1], [0, 0, 1, 1], [], []>} : vector<8x4xf32>, vector<4x256xf32>, vector<8x256xf32> -> vector<8x256xf32>
    %55 = arith.addf %46, %54 : vector<8x256xf32>
    %c241_i32 = arith.constant 241 : i32
    %56 = tpu.dynamic_rotate %5 by %c241_i32 dim 1 : vector<4x256xf32>, i32 -> vector<4x256xf32>
    %c6 = arith.constant 6 : index
    %c0_39 = arith.constant 0 : index
    %c0_40 = arith.constant 0 : index
    %57 = vector.load %arg5[%c6, %c0_39, %c0_40] : memref<9x1x256xf32, #tpu.memory_space<vmem>>, vector<1x1x256xf32>
    %58 = vector.shape_cast %57 : vector<1x1x256xf32> to vector<1x256xf32>
    %59 = vector.broadcast %58 : vector<1x256xf32> to vector<4x256xf32>
    %60 = arith.mulf %56, %59 : vector<4x256xf32>
    %c6_41 = arith.constant 6 : index
    %c0_42 = arith.constant 0 : index
    %c0_43 = arith.constant 0 : index
    %61 = vector.load %arg4[%c6_41, %c0_42, %c0_43] : memref<9x8x4xf32, #tpu.memory_space<vmem>>, vector<1x8x4xf32>
    %62 = vector.shape_cast %61 : vector<1x8x4xf32> to vector<8x4xf32>
    %cst_44 = arith.constant dense<0.000000e+00> : vector<8x256xf32>
    %63 = tpu.matmul %62, %60, %cst_44 {dimension_numbers = #tpu.dot_dimension_numbers<[1], [0], [0], [1], [0, 0, 1, 1], [], []>} : vector<8x4xf32>, vector<4x256xf32>, vector<8x256xf32> -> vector<8x256xf32>
    %64 = arith.addf %55, %63 : vector<8x256xf32>
    %c240_i32 = arith.constant 240 : i32
    %65 = tpu.dynamic_rotate %5 by %c240_i32 dim 1 : vector<4x256xf32>, i32 -> vector<4x256xf32>
    %c7 = arith.constant 7 : index
    %c0_45 = arith.constant 0 : index
    %c0_46 = arith.constant 0 : index
    %66 = vector.load %arg5[%c7, %c0_45, %c0_46] : memref<9x1x256xf32, #tpu.memory_space<vmem>>, vector<1x1x256xf32>
    %67 = vector.shape_cast %66 : vector<1x1x256xf32> to vector<1x256xf32>
    %68 = vector.broadcast %67 : vector<1x256xf32> to vector<4x256xf32>
    %69 = arith.mulf %65, %68 : vector<4x256xf32>
    %c7_47 = arith.constant 7 : index
    %c0_48 = arith.constant 0 : index
    %c0_49 = arith.constant 0 : index
    %70 = vector.load %arg4[%c7_47, %c0_48, %c0_49] : memref<9x8x4xf32, #tpu.memory_space<vmem>>, vector<1x8x4xf32>
    %71 = vector.shape_cast %70 : vector<1x8x4xf32> to vector<8x4xf32>
    %cst_50 = arith.constant dense<0.000000e+00> : vector<8x256xf32>
    %72 = tpu.matmul %71, %69, %cst_50 {dimension_numbers = #tpu.dot_dimension_numbers<[1], [0], [0], [1], [0, 0, 1, 1], [], []>} : vector<8x4xf32>, vector<4x256xf32>, vector<8x256xf32> -> vector<8x256xf32>
    %73 = arith.addf %64, %72 : vector<8x256xf32>
    %c239_i32 = arith.constant 239 : i32
    %74 = tpu.dynamic_rotate %5 by %c239_i32 dim 1 : vector<4x256xf32>, i32 -> vector<4x256xf32>
    %c8 = arith.constant 8 : index
    %c0_51 = arith.constant 0 : index
    %c0_52 = arith.constant 0 : index
    %75 = vector.load %arg5[%c8, %c0_51, %c0_52] : memref<9x1x256xf32, #tpu.memory_space<vmem>>, vector<1x1x256xf32>
    %76 = vector.shape_cast %75 : vector<1x1x256xf32> to vector<1x256xf32>
    %77 = vector.broadcast %76 : vector<1x256xf32> to vector<4x256xf32>
    %78 = arith.mulf %74, %77 : vector<4x256xf32>
    %c8_53 = arith.constant 8 : index
    %c0_54 = arith.constant 0 : index
    %c0_55 = arith.constant 0 : index
    %79 = vector.load %arg4[%c8_53, %c0_54, %c0_55] : memref<9x8x4xf32, #tpu.memory_space<vmem>>, vector<1x8x4xf32>
    %80 = vector.shape_cast %79 : vector<1x8x4xf32> to vector<8x4xf32>
    %cst_56 = arith.constant dense<0.000000e+00> : vector<8x256xf32>
    %81 = tpu.matmul %80, %78, %cst_56 {dimension_numbers = #tpu.dot_dimension_numbers<[1], [0], [0], [1], [0, 0, 1, 1], [], []>} : vector<8x4xf32>, vector<4x256xf32>, vector<8x256xf32> -> vector<8x256xf32>
    %82 = arith.addf %73, %81 : vector<8x256xf32>
    %c0_57 = arith.constant 0 : index
    %c0_58 = arith.constant 0 : index
    %c0_59 = arith.constant 0 : index
    %83 = vector.load %arg3[%c0_57, %c0_58, %c0_59] : memref<1x8x1xf32, #tpu.memory_space<vmem>>, vector<1x8x1xf32>
    %84 = vector.shape_cast %83 : vector<1x8x1xf32> to vector<8x1xf32>
    %85 = vector.broadcast %84 : vector<8x1xf32> to vector<8x256xf32>
    %86 = arith.mulf %82, %85 : vector<8x256xf32>
    %cst_60 = arith.constant 0.000000e+00 : f32
    %87 = vector.broadcast %cst_60 : f32 to vector<8x256xf32>
    %88 = arith.maximumf %86, %87 : vector<8x256xf32>
    %89 = math.absf %86 : vector<8x256xf32>
    %cst_61 = arith.constant 0.000000e+00 : f32
    %90 = vector.broadcast %cst_61 : f32 to vector<8x256xf32>
    %91 = arith.subf %90, %89 : vector<8x256xf32>
    %92 = math.exp %91 : vector<8x256xf32>
    %93 = math.log1p %92 : vector<8x256xf32>
    %94 = arith.addf %88, %93 : vector<8x256xf32>
    %95 = math.tanh %94 : vector<8x256xf32>
    %96 = arith.mulf %86, %95 : vector<8x256xf32>
    %c0_62 = arith.constant 0 : index
    %c0_63 = arith.constant 0 : index
    %c0_64 = arith.constant 0 : index
    %97 = vector.load %arg6[%c0_62, %c0_63, %c0_64] : memref<1x8x256xf32, #tpu.memory_space<vmem>>, vector<1x8x256xf32>
    %98 = vector.shape_cast %97 : vector<1x8x256xf32> to vector<8x256xf32>
    %99 = vector.shape_cast %96 : vector<8x256xf32> to vector<1x8x256xf32>
    tpu.vector_store %arg6[%c0_62, %c0_63, %c0_64], %99 {strides = array<i32>} : memref<1x8x256xf32, #tpu.memory_space<vmem>>, vector<1x8x256xf32>,
    return
  }
  func.func @transform_0(%arg0: i32) -> (i32, i32, i32) {
    %c0_i32 = arith.constant 0 : i32
    %c0_i32_0 = arith.constant 0 : i32
    %c0_i32_1 = arith.constant 0 : i32
    return %arg0, %c0_i32, %c0_i32_0 : i32, i32, i32
  }
  func.func @transform_1(%arg0: i32) -> (i32, i32, i32) {
    %c0_i32 = arith.constant 0 : i32
    %c0_i32_0 = arith.constant 0 : i32
    %c0_i32_1 = arith.constant 0 : i32
    return %arg0, %c0_i32, %c0_i32_0 : i32, i32, i32
  }
  func.func @transform_2(%arg0: i32) -> (i32, i32, i32) {
    %c0_i32 = arith.constant 0 : i32
    %c0_i32_0 = arith.constant 0 : i32
    %c0_i32_1 = arith.constant 0 : i32
    return %arg0, %c0_i32, %c0_i32_0 : i32, i32, i32
  }
  func.func @transform_3(%arg0: i32) -> (i32, i32, i32) {
    %c0_i32 = arith.constant 0 : i32
    %c0_i32_0 = arith.constant 0 : i32
    %c0_i32_1 = arith.constant 0 : i32
    %c0_i32_2 = arith.constant 0 : i32
    return %c0_i32, %c0_i32_0, %c0_i32_1 : i32, i32, i32
  }
  func.func @transform_4(%arg0: i32) -> (i32, i32, i32) {
    %c0_i32 = arith.constant 0 : i32
    %c0_i32_0 = arith.constant 0 : i32
    %c0_i32_1 = arith.constant 0 : i32
    %c0_i32_2 = arith.constant 0 : i32
    return %c0_i32, %c0_i32_0, %c0_i32_1 : i32, i32, i32
  }
  func.func @transform_5(%arg0: i32) -> (i32, i32, i32) {
    %c0_i32 = arith.constant 0 : i32
    %c0_i32_0 = arith.constant 0 : i32
    %c0_i32_1 = arith.constant 0 : i32
    return %arg0, %c0_i32, %c0_i32_0 : i32, i32, i32
  }
}

</mosaic_0001>

<bundles_post_ra>
// kernel: tpu_custom_call.1
= control target key start
LH: loop header
LB: loop body
LE: loop exit
PB: predicated region body
PF: predicated region fallthrough
CT: control target
= control target key end

     0   :  { %10 = vsyncpa [#allocation3], 0  ;;  %s1824_s0 = inlined_call_operand.vmem [shape: f32[2,4,256], index: 0, kind: input, shape index: {}]   ;;  %s1825_s1 = inlined_call_operand.vmem [shape: f32[2,4,1], index: 1, kind: input, shape index: {}]   ;;  %s1826_s2 = inlined_call_operand.vmem [shape: f32[2,8,1], index: 2, kind: input, shape index: {}]   ;;  %s1827_s3 = inlined_call_operand.vmem [shape: f32[9,8,4], index: 3, kind: input, shape index: {}]   ;;  %s1828_s4 = inlined_call_operand.vmem [shape: f32[9,1,256], index: 4, kind: input, shape index: {}]   ;;  %s1829_s5 = inlined_call_operand.hbm [shape: f32[2,8,256], index: 5, kind: output, shape index: {}]  }
   0x1   :  { %12 = vsyncpa [#allocation3 + $0x1], 0  ;;  %s1589_s18 = smov 0   ;;  %s1591_s19 = smov 0  }
   0x2   :  { %s1593_s20 = smov 0   ;;  %s1595_s21 = smov 0  }
   0x3 LB: > { %s1610_s22 = sadd.s32 4294967295, %s1545_s21   ;;  %s1345_s23 = sadd.s32 4294967294, %s1545_s21   ;;  %s1545_s21 = sphi %s1595_s21, %s1835_s21   ;;  %s1541_s20 = sphi %s1593_s20, %s1834_s20   ;;  %s1537_s19 = sphi %s1591_s19, %s1833_s19   ;;  %s1533_s18 = sphi %s1589_s18, %s1832_s18  }
   0x4   : > { %s1614_s24 = sadd.s32 1, %s1545_s21   ;;  %s145_s25 = sadd.s32 1, %s1541_s20 }
   0x5   : > { %s142_s26 = ssub.s32 %s1545_s21, %s1614_s24  ;;  %p155_p0 = scmp.ne.s32.totalorder %s1541_s20, %s1537_s19 }
   0x6   : > { %p143_p1 = scmp.eq.s32.totalorder %s142_s26, 0  ;;  %p156_p2 = scmp.eq.s32.totalorder %s1610_s22, 1 }
   0x7   : > { %p161_p3 = scmp.ne.s32.totalorder %s1537_s19, %s1533_s18  ;;  %p162_p4 = scmp.eq.s32.totalorder %s1345_s23, 1 }
   0x8   : > { %s1625_s27 = scalar_select %p143_p1, %s1541_s20, %s145_s25  }
   0x9   : > { %p1627_p5 = por %p156_p2, %p155_p0  ;;  %p1631_p6 = por %p162_p4, %p161_p3 }
   0xa   : > { %p1348_p7 = scmp.ge.s32.totalorder %s1545_s21, 1  ;;  %p208_p8 = scmp.lt.s32.totalorder %s1545_s21, 3 }
   0xc   : > { %p209_p9 = pnand %p1348_p7, %p208_p8 }
   0xd   : > { %p244_p10 = scmp.lt.s32.totalorder (!%p209_p9), %s1610_s22, 1  ;;  %v1547_v0 = vmov (!%p209_p9), 0   ;;  %v1548_v2 = vmov (!%p209_p9), 839922192   ;;  %v266_v4 = vlaneseq (!%p209_p9)  ;;  %v1549_v5 = vmov (!%p209_p9), 0.0   ;;  %s1550_s14 = smov (!%p209_p9), 127  }
   0xe   : > { %212 = sbr.rel (%p209_p9) target bundleno = 585 (0x249), region = 40  ;;  %1469 = vset.pattern.permute.xlu0 (!%p209_p9), %v1547_v0  ;;  %1470 = vset.pattern.permute.xlu1 (!%p209_p9), %v1547_v0  ;;  %v264_v3 = vunpack.c.l.s4 (!%p209_p9), %v1548_v2  ;;  %vm327_vm0 = vcmask (!%p209_p9), 1043456   ;;  %s1551_s15 = smov (!%p209_p9), 16   ;;  %vm323_vm1 = vcmask (!%p209_p9), 31744   ;;  %v1372_v14 = vld [vmem:[%s1827_s3 + $0x20] sm:$0xff] (!%p209_p9)  ;;  %v1355_v41 = vld [vmem:[%s1827_s3 + $0x8] sm:$0xff] (!%p209_p9) }
   0xf   : > { %770 = vmatprep.mubr.f32.mxu0 (!%p209_p9), %v1549_v5  ;;  %398 = vmatprep.mubr.f32.mxu1 (!%p209_p9), %v1549_v5  ;;  %v267_v7 = vshrl.u32 (!%p209_p9), %v266_v4, 7  ;;  %s1552_s23 = smov (!%p209_p9), 17   ;;  %s1553_s25 = smov (!%p209_p9), 113   ;;  %v1665_v16 = vand.u32 (!%p209_p9), 127, %v266_v4  ;;  %v1376_v19 = vld [vmem:[%s1828_s4 + $0xa] sm:$0x3] (!%p209_p9) }
  0x10   : > { %v265_v6 = vunpack.c.0.s8 (!%p209_p9), %v264_v3  ;;  %s1554_s26 = smov (!%p209_p9), 15   ;;  %s1556_s7 = smov (!%p209_p9), 1   ;;  %v1354_v20 = vld [vmem:[%s1828_s4 + $0x2] sm:$0x3] (!%p209_p9)  ;;  %v284_v24 = vld [vmem:[%s1828_s4] sm:$0x3] (!%p209_p9) }
  0x11   : > { %s1557_s12 = smov (!%p209_p9), 111   ;;  %v1667_v17 = vsub.s32 (!%p209_p9), 0, %v267_v7  ;;  %v1669_v18 = vsub.s32 (!%p209_p9), 1, %v267_v7  ;;  %vm783_vm2 = vcmp.lt.s32.totalorder (!%p209_p9), %v1665_v16, 127  ;;  %vm303_vm3 = vcmp.lt.s32.totalorder (!%p209_p9), %v1665_v16, 16  ;;  %v1377_v42 = vld [vmem:[%s1827_s3 + $0x28] sm:$0xff] (!%p209_p9) }
  0x12   : > { %v268_v8 = vsub.s32 (!%p209_p9), %v265_v6, %v267_v7  ;;  %vm281_vm4 = vcmp.lt.s32.totalorder (!%p209_p9), %v1665_v16, 17  ;;  %v1381_v40 = vld [vmem:[%s1828_s4 + $0xc] sm:$0x3] (!%p209_p9)  ;;  %vm889_vm5 = vcmp.lt.s32.totalorder (!%p209_p9), %v1665_v16, 113  ;;  %v1362_v51 = vld [vmem:[%s1828_s4 + $0x4] sm:$0x3] (!%p209_p9) }
  0x13   : > { %v792_v23 = vrot.slane (!%p209_p9), %v1376_v19, %v1667_v17  ;;  %v796_v25 = vrot.slane (!%p209_p9), %v1376_v19, %v1669_v18  ;;  %v312_v26 = vrot.slane (!%p209_p9), %v1354_v20, %v1667_v17  ;;  %v316_v27 = vrot.slane (!%p209_p9), %v1354_v20, %v1669_v18  ;;  %v1386_v60 = vld [vmem:[%s1828_s4 + $0xe] sm:$0x3] (!%p209_p9)  ;;  %v298_v61 = vld [vmem:[%s1827_s3] sm:$0xff] (!%p209_p9)  ;;  %v1382_v62 = vld [vmem:[%s1827_s3 + $0x30] sm:$0xff] (!%p209_p9) }
  0x14   : > { %v289_v30 = vrot.slane (!%p209_p9), %v284_v24, %v1667_v17  ;;  %v293_v31 = vrot.slane (!%p209_p9), %v284_v24, %v1669_v18  ;;  %v898_v47 = vrot.slane (!%p209_p9), %v1381_v40, %v1667_v17  ;;  %v902_v50 = vrot.slane (!%p209_p9), %v1381_v40, %v1669_v18  ;;  %v1391_v20 = vld [vmem:[%s1828_s4 + $0x10] sm:$0x3] (!%p209_p9) }
  0x15   : > { %s1639_s30 = scalar_select %p244_p10, %s1610_s22, 1  ;;  %vm489_vm6 = vcmp.lt.s32.totalorder %v1665_v16, 15  ;;  %v498_v58 = vrot.slane %v1362_v51, %v1667_v17  ;;  %v502_v59 = vrot.slane %v1362_v51, %v1669_v18  ;;  %v1004_v3 = vrot.slane %v1386_v60, %v1667_v17 }
  0x16   : > { %vm995_vm7 = vcmp.lt.s32.totalorder %v1665_v16, 112  ;;  %v1008_v7 = vrot.slane %v1386_v60, %v1669_v18  ;;  %vm595_vm8 = vcmp.lt.s32.totalorder %v1665_v16, 1  ;;  %vm1101_vm9 = vcmp.lt.s32.totalorder %v1665_v16, 111  ;;  %v1368_v16 = vld [vmem:[%s1827_s3 + $0x18] sm:$0xff] }
  0x17   : > { %s1352_s6 = sshll.u32 %s1639_s30, 2  ;;  %s1401_s10 = sshll.u32 %s1639_s30, 3 }
  0x18   : > { %s252_s9 = scalar_lea.vmem %s1825_s1, %s1352_s6  ;;  %s248_s13 = scalar_lea.vmem %s1824_s0, %s1401_s10 }
  0x19   : > { %v258_v1 = vld [vmem:[%s252_s9] sm:$0xf]  ;;  %s1555_s6 = smov 112   ;;  %s256_s11 = scalar_lea.vmem %s1826_s2, %s1401_s10 }
  0x1a   : > { %261 = vperm.xlu0 %1469, %v258_v1   ;;  %v257_v10 = vld [vmem:[%s248_s13] sm:$0xff]  ;;  %s241_s13 = sand.u32 1, %s1537_s19   ;;  %s1402_s30 = sshll.u32 %s1610_s22, 8 }
  0x1b   : > { %v1203_v15 = vld [vmem:[%s256_s11] sm:$0xff] }
  0x99   : > { %v262_v9 = vpop.permute.xlu0 %261 }
  0x9a   : > { %v269_v11 = vrot.slane %v262_v9, %v268_v8  ;;  %v1367_v8 = vld [vmem:[%s1828_s4 + $0x6] sm:$0x3] }
  0x9b   : > { %v608_v19 = vrot.slane %v1367_v8, %v1669_v18 }
  0x9c   : > { %v271_v12 = vmul.f32 %v269_v11, %v257_v10 }
  0x9e   : > { %779 = vrot.lane.b32.xlu1 %v271_v12, %s1550_s14  ;;  %299 = vrot.lane.b32.xlu0 %v271_v12, %s1551_s15  ;;  %v273_v13 = vcombine.high %v271_v12, %v271_v12 }
  0xa0   : > { %1373 = vmatprep.subr.msk.mxu0 %vm327_vm0, %v273_v13 }
  0xa1   : > { %1374 = vmatpush1.msk.msra.mxu0 %vm327_vm0, %v271_v12 }
  0xa2   : > { %781 = vrot.lane.b32.xlu0 %v273_v13, %s1550_s14  ;;  %301 = vrot.lane.b32.xlu1 %v273_v13, %s1551_s15  ;;  %s1349_s14 = sshll.u32 %s241_s13, 4 }
  0xa3   : > { %1375 = vmatmul.mubr.msk.f32.vlgmr.msra.gmra.mrb[0].mxu0 %vm323_vm1, %v1372_v14  ;;  %s243_s15 = scalar_lea.vmem [#allocation2], %s1349_s14 }
  0xa4   : > { %876 = vmatprep.mubr.f32.mxu0 %v1549_v5  ;;  %s1262_s10 = sshll.u32 %s243_s15, 4  ;;  %s1784_s10 = int_to_ptr.vmem [resolvable:$true] %s1262_s10 }
  0xa5   : > { %s1483_s22 = scalar_lea.vmem %s1784_s10, 256 }
  0xa6   : > { %277 = vrot.lane.b32.xlu0 %v273_v13, %s1552_s23  ;;  %275 = vrot.lane.b32.xlu1 %v271_v12, %s1552_s23  ;;  %s1782_s23 = scalar_lea.hbm %s1829_s5, %s1402_s30  ;;  %p1484_p11 = scmp.ne.s32.totalorder %s1784_s10, %s1483_s22 }
  0xa8   : > { %p1485_p12 = pnand %p1484_p11, %p1627_p5 }
  0xaa   : > { %887 = vrot.lane.b32.xlu0 %v273_v13, %s1553_s25  ;;  %885 = vrot.lane.b32.xlu1 %v271_v12, %s1553_s25  ;;  %s1248_s25 = scalar_lea.sflag [#allocation3], %s241_s13  ;;  %p1486_p13 = pneg %p1485_p12 }
  0xae   : > { %487 = vrot.lane.b32.xlu0 %v273_v13, %s1554_s26  ;;  %485 = vrot.lane.b32.xlu1 %v271_v12, %s1554_s26  ;;  %s1558_s26 = smov [#allocation2]  }
  0xb2   : > { %993 = vrot.lane.b32.xlu0 %v273_v13, %s1555_s6  ;;  %991 = vrot.lane.b32.xlu1 %v271_v12, %s1555_s6  ;;  %s1487_s6 = sshll.u32 %s1558_s26, 4  ;;  %s1488_s6 = int_to_ptr.vmem [resolvable:$false] %s1487_s6 }
  0xb3   : > { %p1490_p0 = scmp.lt.s32.totalorder %s1784_s10, %s1488_s6 }
  0xb6   : > { %593 = vrot.lane.b32.xlu0 %v273_v13, %s1556_s7  ;;  %591 = vrot.lane.b32.xlu1 %v271_v12, %s1556_s7  ;;  %s1489_s7 = scalar_lea.vmem %s1488_s6, 512 }
  0xb7   : > { %p1491_p1 = scmp.lt.s32.totalorder %s1489_s7, %s1483_s22 }
  0xb9   : > { %p1492_p2 = por %p1491_p1, %p1490_p0 }
  0xba   : > { %1099 = vrot.lane.b32.xlu0 %v273_v13, %s1557_s12  ;;  %1097 = vrot.lane.b32.xlu1 %v271_v12, %s1557_s12 }
  0xbb   : > { %p1493_p3 = pnand %p1492_p2, %p1486_p13 }
  0xbe   : > { %1206 = vperm.xlu1 %1470, %v1203_v15   ;;  %v604_v15 = vrot.slane %v1367_v8, %v1667_v17 }
 0x110   : > { %v780_v21 = vpop.permute.xlu1 %779  ;;  %v300_v22 = vpop.permute.xlu0 %299 }
 0x114   : > { %v782_v28 = vpop.permute.xlu0 %781  ;;  %v302_v29 = vpop.permute.xlu1 %301 }
 0x115   : > { %v784_v32 = vsel %vm783_vm2, %v780_v21, %v782_v28  ;;  %v785_v33 = vsel %vm783_vm2, %v782_v28, %v780_v21  ;;  %v304_v34 = vsel %vm303_vm3, %v300_v22, %v302_v29  ;;  %v305_v35 = vsel %vm303_vm3, %v302_v29, %v300_v22  ;;  %v1363_v21 = vld [vmem:[%s1827_s3 + $0x10] sm:$0xff]  ;;  %v1387_v22 = vld [vmem:[%s1827_s3 + $0x38] sm:$0xff] }
 0x116   : > { %v799_v36 = vmul.f32 %v792_v23, %v784_v32  ;;  %v800_v37 = vmul.f32 %v796_v25, %v785_v33  ;;  %v319_v38 = vmul.f32 %v312_v26, %v305_v35  ;;  %v320_v39 = vmul.f32 %v316_v27, %v304_v34 }
 0x117   : > { %v1110_v27 = vrot.slane %v1391_v20, %v1667_v17 }
 0x118   : > { %v278_v43 = vpop.permute.xlu0 %277  ;;  %1356 = vmatprep.subr.msk.mxu1 %vm327_vm0, %v320_v39  ;;  %v276_v44 = vpop.permute.xlu1 %275  ;;  %1378 = vmatprep.subr.msk.mxu0 %vm327_vm0, %v800_v37 }
 0x119   : > { %v282_v45 = vsel %vm281_vm4, %v276_v44, %v278_v43  ;;  %v283_v46 = vsel %vm281_vm4, %v278_v43, %v276_v44  ;;  %1357 = vmatpush1.msk.msra.mxu1 %vm327_vm0, %v319_v38  ;;  %1379 = vmatpush1.msk.msra.mxu0 %vm327_vm0, %v799_v36 }
 0x11a   : > { %v296_v48 = vmul.f32 %v289_v30, %v283_v46  ;;  %v297_v49 = vmul.f32 %v293_v31, %v282_v45  ;;  %1358 = vmatmul.mubr.msk.f32.vlgmr.msra.gmra.mrb[0].mxu1 %vm323_vm1, %v1355_v41  ;;  %1380 = vmatmul.mubr.msk.f32.vlgmr.msra.gmra.mrb[0].mxu0 %vm323_vm1, %v1377_v42  ;;  %v1114_v30 = vrot.slane %v1391_v20, %v1669_v18  ;;  %v1392_v18 = vld [vmem:[%s1827_s3 + $0x40] sm:$0xff] }
 0x11b   : > { %478 = vmatprep.mubr.f32.mxu1 %v1549_v5  ;;  %982 = vmatprep.mubr.f32.mxu0 %v1549_v5 }
 0x11c   : > { %v888_v52 = vpop.permute.xlu0 %887  ;;  %1359 = vmatprep.subr.msk.mxu1 %vm327_vm0, %v297_v49  ;;  %v886_v53 = vpop.permute.xlu1 %885 }
 0x11d   : > { %v890_v54 = vsel %vm889_vm5, %v886_v53, %v888_v52  ;;  %v891_v55 = vsel %vm889_vm5, %v888_v52, %v886_v53  ;;  %1360 = vmatpush1.msk.msra.mxu1 %vm327_vm0, %v296_v48 }
 0x11e   : > { %v905_v56 = vmul.f32 %v898_v47, %v890_v54  ;;  %v906_v57 = vmul.f32 %v902_v50, %v891_v55 }
 0x120   : > { %v488_v63 = vpop.permute.xlu0 %487  ;;  %v486_v0 = vpop.permute.xlu1 %485  ;;  %1383 = vmatprep.subr.msk.mxu0 %vm327_vm0, %v906_v57 }
 0x121   : > { %v490_v1 = vsel %vm489_vm6, %v486_v0, %v488_v63  ;;  %v491_v2 = vsel %vm489_vm6, %v488_v63, %v486_v0  ;;  %1384 = vmatpush1.msk.msra.mxu0 %vm327_vm0, %v905_v56 }
 0x122   : > { %v505_v4 = vmul.f32 %v498_v58, %v491_v2  ;;  %v506_v6 = vmul.f32 %v502_v59, %v490_v1  ;;  %1361 = vmatmul.mubr.msk.f32.vlgmr.msra.gmra.mrb[0].mxu1 %vm323_vm1, %v298_v61  ;;  %1385 = vmatmul.mubr.msk.f32.vlgmr.msra.gmra.mrb[0].mxu0 %vm323_vm1, %v1382_v62 }
 0x123   : > { %582 = vmatprep.mubr.f32.mxu1 %v1549_v5  ;;  %1088 = vmatprep.mubr.f32.mxu0 %v1549_v5 }
 0x124   : > { %v994_v9 = vpop.permute.xlu0 %993  ;;  %1364 = vmatprep.subr.msk.mxu1 %vm327_vm0, %v506_v6  ;;  %v992_v10 = vpop.permute.xlu1 %991 }
 0x125   : > { %v996_v11 = vsel %vm995_vm7, %v992_v10, %v994_v9  ;;  %v997_v12 = vsel %vm995_vm7, %v994_v9, %v992_v10  ;;  %1365 = vmatpush1.msk.msra.mxu1 %vm327_vm0, %v505_v4 }
 0x126   : > { %v1011_v13 = vmul.f32 %v1004_v3, %v996_v11  ;;  %v1012_v14 = vmul.f32 %v1008_v7, %v997_v12 }
 0x128   : > { %v594_v23 = vpop.permute.xlu0 %593  ;;  %v592_v24 = vpop.permute.xlu1 %591  ;;  %1388 = vmatprep.subr.msk.mxu0 %vm327_vm0, %v1012_v14 }
 0x129   : > { %v596_v25 = vsel %vm595_vm8, %v592_v24, %v594_v23  ;;  %v597_v26 = vsel %vm595_vm8, %v594_v23, %v592_v24  ;;  %1389 = vmatpush1.msk.msra.mxu0 %vm327_vm0, %v1011_v13 }
 0x12a   : > { %v611_v28 = vmul.f32 %v604_v15, %v597_v26  ;;  %v612_v29 = vmul.f32 %v608_v19, %v596_v25  ;;  %1366 = vmatmul.mubr.msk.f32.vlgmr.msra.gmra.mrb[0].mxu1 %vm323_vm1, %v1363_v21  ;;  %1390 = vmatmul.mubr.msk.f32.vlgmr.msra.gmra.mrb[0].mxu0 %vm323_vm1, %v1387_v22 }
 0x12b   : > { %688 = vmatprep.mubr.f32.mxu1 %v1549_v5  ;;  %1194 = vmatprep.mubr.f32.mxu0 %v1549_v5 }
 0x12c   : > { %v1100_v31 = vpop.permute.xlu0 %1099  ;;  %1369 = vmatprep.subr.msk.mxu1 %vm327_vm0, %v612_v29  ;;  %v1098_v32 = vpop.permute.xlu1 %1097 }
 0x12d   : > { %v1102_v33 = vsel %vm1101_vm9, %v1098_v32, %v1100_v31  ;;  %v1103_v17 = vsel %vm1101_vm9, %v1100_v31, %v1098_v32  ;;  %1370 = vmatpush1.msk.msra.mxu1 %vm327_vm0, %v611_v28 }
 0x12e   : > { %v1117_v34 = vmul.f32 %v1110_v27, %v1102_v33  ;;  %v1118_v35 = vmul.f32 %v1114_v30, %v1103_v17 }
 0x130   : > { %1393 = vmatprep.subr.msk.mxu0 %vm327_vm0, %v1118_v35 }
 0x131   : > { %1394 = vmatpush1.msk.msra.mxu0 %vm327_vm0, %v1117_v34 }
 0x132   : > { %1371 = vmatmul.mubr.msk.f32.vlgmr.msra.gmra.mrb[0].mxu1 %vm323_vm1, %v1368_v16  ;;  %1395 = vmatmul.mubr.msk.f32.vlgmr.msra.gmra.mrb[0].mxu0 %vm323_vm1, %v1392_v18 }
 0x13d   : > { %v1207_v5 = vpop.permute.xlu1 %1206 }
 0x205   : > { %v690_v36 = vpop.f32.mrb[0].mxu1  ;;  %v1196_v37 = vpop.f32.mrb[0].mxu0 }
 0x206   : > { %v1403_v38 = vadd.f32 %v1196_v37, %v690_v36  ;;  %v692_v39 = vpop.f32.mrb[1].mxu1  ;;  %v1198_v40 = vpop.f32.mrb[1].mxu0 }
 0x207   : > { %v1404_v41 = vadd.f32 %v1198_v40, %v692_v39 }
 0x208   : > { %v1209_v42 = vmul.f32 %v1403_v38, %v1207_v5 }
 0x209   : > { %v1210_v43 = vmul.f32 %v1404_v41, %v1207_v5 }
 0x20a   : > { %v1213_v44 = vand.u32 2147483647, %v1209_v42  ;;  %v1211_v0 = vmax.f32 %v1209_v42, 0.0 }
 0x20b   : > { %v1214_v45 = vand.u32 2147483647, %v1210_v43  ;;  %v1212_v3 = vmax.f32 %v1210_v43, 0.0 }
 0x20c   : > { %v1215_v46 = vsub.f32 0.0, %v1213_v44 }
 0x20d   : > { %v1216_v47 = vsub.f32 0.0, %v1214_v45 }
 0x20e   : > { %v1217_v48 = vmul.f32 1.442695, %v1215_v46 }
 0x20f   : > { %v1219_v49 = vmul.f32 1.442695, %v1216_v47 }
 0x210   : > { %1471 = vpow2.f32 %v1217_v48 }
 0x211   : > { %1473 = vpow2.f32 %v1219_v49 }
 0x21a   : > { %v1472_v50 = vpop.eup %1471 }
 0x21b   : > { %v1474_v51 = vpop.eup %1473  ;;  %v1221_v52 = vadd.f32 1.0, %v1472_v50  ;;  %v1224_v54 = vmul.f32 -0.5, %v1472_v50  ;;  %v1227_v57 = vand.u32 2147483647, %v1472_v50 }
 0x21c   : > { %v1230_v53 = vadd.f32 1.0, %v1474_v51  ;;  %v1233_v55 = vmul.f32 -0.5, %v1474_v51  ;;  %v1236_v59 = vand.u32 2147483647, %v1474_v51 }
 0x21d   : > { %1475 = vlog2.f32 %v1221_v52  ;;  %v1225_v56 = vadd.f32 1.0, %v1224_v54  ;;  %vm1228_vm10 = vcmp.lt.f32.partialorder %v1227_v57, 0.0004427343 }
 0x21e   : > { %1477 = vlog2.f32 %v1230_v53  ;;  %v1234_v58 = vadd.f32 1.0, %v1233_v55  ;;  %vm1237_vm11 = vcmp.lt.f32.partialorder %v1236_v59, 0.0004427343 }
 0x21f   : > { %v1226_v63 = vmul.f32 %v1472_v50, %v1225_v56 }
 0x220   : > { %v1235_v2 = vmul.f32 %v1474_v51, %v1234_v58 }
 0x227   : > { %v1476_v60 = vpop.eup %1475 }
 0x228   : > { %v1478_v61 = vpop.eup %1477  ;;  %v1223_v62 = vmul.f32 0.6931472, %v1476_v60 }
 0x229   : > { %v1232_v1 = vmul.f32 0.6931472, %v1478_v61 }
 0x22a   : > { %v1229_v4 = vsel %vm1228_vm10, %v1226_v63, %v1223_v62 }
 0x22b   : > { %v1238_v6 = vsel %vm1237_vm11, %v1235_v2, %v1232_v1  ;;  %v1239_v7 = vadd.f32 %v1229_v4, %v1211_v0 }
 0x22c   : > { %v1240_v8 = vadd.f32 %v1238_v6, %v1212_v3 }
 0x22d   : > { %1479 = vtanh.f32 %v1239_v7 }
 0x22e   : > { %1481 = vtanh.f32 %v1240_v8 }
 0x237   : > { %v1480_v9 = vpop.eup %1479 }
 0x238   : > { %v1482_v10 = vpop.eup %1481  ;;  %v1243_v11 = vmul.f32 %v1480_v9, %v1209_v42 }
 0x239   : > { %v1244_v12 = vmul.f32 %v1482_v10, %v1210_v43 }
 0x23a   : > { %1245 = vst [vmem:[%s243_s15] sm:$0xff] %v1243_v11 }
 0x23b   : > { %1246 = vst [vmem:[%s243_s15 + $0x8] sm:$0xff] %v1244_v12 }
 0x23c   : > { %1496 = shalt.err (!%p1493_p3)
}
 0x23d   : > { %s1497_s8 = scalar_lea.hbm %s1782_s23, 256  ;;  %s1501_s12 = scalar_lea.hbm %s1829_s5, 512 }
 0x23e   : > { %p1498_p4 = scmp.ne.s32.totalorder %s1782_s23, %s1497_s8  ;;  %p1502_p9 = scmp.lt.u32.totalorder %s1782_s23, %s1829_s5 }
 0x23f   : > { %p1503_p10 = scmp.lt.u32.totalorder %s1501_s12, %s1497_s8  ;;  %p1505_p12 = scmp.lt.u32.totalorder %s1497_s8, %s1782_s23 }
 0x240   : > { %p1499_p7 = pnand %p1498_p4, %p1627_p5 }
 0x241   : > { %p1504_p11 = por %p1503_p10, %p1502_p9 }
 0x242   : > { %p1500_p8 = pneg %p1499_p7 }
 0x243   : > { %p1506_p13 = por %p1505_p12, %p1504_p11 }
 0x245   : > { %p1507_p0 = pnand %p1506_p13, %p1500_p8 }
 0x247   : > { %1510 = shalt.err (!%p1507_p0)
}
 0x248   : > { %1419 = dma.vmem_to_hbm [thread:$0]  (%p1627_p5), %s1784_s10, 256, %s1782_s23, %s1248_s25  }
 0x249 PF: > { %p1425_p1 = scmp.ge.s32.totalorder %s1545_s21, 2  ;;  %s1274_s30 = sand.u32 1, %s1533_s18  }
 0x24a   : > { %s1275_s15 = scalar_lea.sflag [#allocation3], %s1274_s30 }
 0x24b   : > { %p1422_p2 = pnand %p1425_p1, %p1631_p6 }
 0x24d   : > { %1528 = dma.done.wait (!%p1422_p2), %s1275_s15, 256  }
 0x24e   : > { %1530 = vsyncadd (!%p1422_p2), %s1275_s15, 4294967040  ;;  %p15_p3 = scmp.ge.s32.totalorder %s1614_s24, 4   ;;  %s1832_s18 = smov %s1537_s19 }
 0x24f   : > { %s1833_s19 = smov %s1541_s20  ;;  %s1834_s20 = smov %s1625_s27 }
 0x250   : > { %s1835_s21 = smov %s1614_s24  ;;  %17 = sbr.rel (!%p15_p3) target bundleno = 3 (0x3), region = 96 }
 0x257   :  { %1280 = vsyncpa [#allocation3], 1 }
 0x258   :  { %1282 = vsyncpa [#allocation3 + $0x1], 1 }

</bundles_post_ra>
